<compile_context>
chip_gen: v7x
topology: tpu7x:2x2x1
jax: 0.10.0
libtpu: 0.0.40
codegen_flags: <defaults>
</compile_context>

<pallas_src>
import jax
import jax.numpy as jnp
from jax import lax
from jax.experimental import pallas as pl
from jax.experimental.pallas import tpu as pltpu

_LANES = 128
_FOLD_SUB = 8                          # f32 vreg row group (accumulator shape)
_TARGET_BLOCK_BYTES = 2 * 1024 * 1024  # ~2 MiB of input per block per tensor
_NUM_SPLITS = 2                        # leading "parallel" grid axis (2 TCs on v7x)
_SENTINEL = 80.0                       # softplus(-80) ~ 1.8e-35: lane pad contributes ~0
_PALLAS_MIN_ELEMENTS = 1 << 17         # below this, plain XLA reduction is faster


def _cdiv(a, b):
    return -(-a // b)


def _round_up(a, m):
    return _cdiv(a, m) * m


def _plan_tiling(rows, dtypes):
    """Pick (tm, nblocks, nb_inner) for a set of (rows, 128) slabs."""
    sub = _FOLD_SUB
    max_item = 1
    for dt in dtypes:
        item = jnp.dtype(dt).itemsize
        max_item = max(max_item, item)
        sub = max(sub, 32 // max(item, 1))     # 8 f32 / 16 bf16 / 32 int8-fp8 packing
    tm = (_TARGET_BLOCK_BYTES // (_LANES * max_item)) // sub * sub
    tm = max(tm, sub)
    tm = min(tm, _round_up(rows, sub))
    nblocks = _cdiv(rows, tm)
    nb_inner = _cdiv(nblocks, _NUM_SPLITS)
    return tm, nblocks, nb_inner


def _make_softplus_sum_kernel(negate, tm, nb_inner, valid_rows, any_partial):
    negate = tuple(bool(b) for b in negate)
    num_in = len(negate)

    def _fold(t):
        # (tm, 128) -> (8, 128): split along vreg-aligned sublane groups, sum the
        # leading (non-vreg) dim -> pure elementwise VALU adds, no XLU, no acc RMW
        # over the full block.
        return t.reshape(tm // _FOLD_SUB, _FOLD_SUB, _LANES).sum(axis=0)

    def kernel(*refs):
        x_refs = refs[:num_in]
        out_ref = refs[num_in]
        acc_ref = refs[num_in + 1]

        c = pl.program_id(0)
        i = pl.program_id(1)

        @pl.when(i == 0)
        def _():
            acc_ref[...] = jnp.zeros_like(acc_ref)

        total = None
        for x_ref, neg in zip(x_refs, negate):
            x = x_ref[...].astype(jnp.float32)
            z = -x if neg else x
            # softplus(z) = max(z, 0) + log1p(exp(-|z|)), with |z| == |x|
            sp = jnp.maximum(z, 0.0) + jnp.log1p(jnp.exp(-jnp.abs(x)))
            total = sp if total is None else total + sp

        if not any_partial:
            acc_ref[...] += _fold(total)
        else:
            gblk = c * nb_inner + i
            is_full = (gblk + 1) * tm <= valid_rows

            @pl.when(is_full)
            def _():
                acc_ref[...] += _fold(total)

            @pl.when(jnp.logical_not(is_full))
            def _():
                # Partial (or fully redundant) block: zero out rows >= valid_rows.
                row = lax.broadcasted_iota(jnp.int32, (tm, _LANES), 0) + gblk * tm
                acc_ref[...] += _fold(jnp.where(row < valid_rows, total, 0.0))

        @pl.when(i == pl.num_programs(1) - 1)
        def _():
            out_ref[...] = acc_ref[...]

    return kernel


def _softplus_sum(tensors, negate):
    """sum over all elements of softplus(+/- t) for each tensor (all same size)."""
    n = int(tensors[0].size)
    rem = n % _LANES
    rows = n // _LANES
    if rem == 0:
        # Common case: zero-copy flatten + reshape (no HBM pad copy at all).
        slabs = [t.reshape(rows, _LANES) for t in tensors]
    else:
        # Rare ragged-lane case: pad the single partial row with a sentinel whose
        # softplus term is ~0 (sign chosen per target).  Costs one copy.
        rows += 1
        slabs = []
        for t, neg in zip(tensors, negate):
            sval = _SENTINEL if neg else -_SENTINEL
            flat = jnp.pad(t.reshape(-1), (0, _LANES - rem), constant_values=sval)
            slabs.append(flat.reshape(rows, _LANES))

    tm, nblocks, nb_inner = _plan_tiling(rows, [t.dtype for t in tensors])
    any_partial = (_NUM_SPLITS * nb_inner * tm != rows)

    if _NUM_SPLITS * nb_inner == nblocks:
        def idx_map(c, i):
            return (c * nb_inner + i, 0)
    else:
        def idx_map(c, i):
            # Grid slots past the real block count re-read the last block; their
            # contribution is zeroed by the in-kernel row mask.
            return (jnp.minimum(c * nb_inner + i, nblocks - 1), 0)

    kernel = _make_softplus_sum_kernel(negate, tm, nb_inner, rows, any_partial)

    partials = pl.pallas_call(
        kernel,
        out_shape=jax.ShapeDtypeStruct((_NUM_SPLITS * _FOLD_SUB, _LANES), jnp.float32),
        grid_spec=pltpu.PrefetchScalarGridSpec(
            num_scalar_prefetch=0,
            grid=(_NUM_SPLITS, nb_inner),
            in_specs=[pl.BlockSpec((tm, _LANES), idx_map) for _ in slabs],
            out_specs=pl.BlockSpec((_FOLD_SUB, _LANES), lambda c, i: (c, 0)),
            scratch_shapes=[pltpu.VMEM((_FOLD_SUB, _LANES), jnp.float32)],
        ),
        compiler_params=pltpu.CompilerParams(
            dimension_semantics=("parallel", "arbitrary"),
            vmem_limit_bytes=32 * 1024 * 1024,
        ),
    )(*slabs)
    # Per-core (8,128) partials -> scalar total.
    return jnp.sum(partials)


def _softplus_mean(x, negate):
    """Plain-XLA fast path for tiny inputs."""
    x = x.astype(jnp.float32)
    z = -x if negate else x
    return jnp.mean(jnp.maximum(z, 0.0) + jnp.log1p(jnp.exp(-jnp.abs(x))))


def adversarial_loss(fake_logits, real_logits=None, *,
                     min_pallas_elements=_PALLAS_MIN_ELEMENTS):
    """Forward pass of AdversarialLoss.

    # TODO(synk): the module's stateful `self.loss_value` attribute is not modeled.
    """
    n_fake = int(fake_logits.size)
    if real_logits is None:
        # generator: mean(BCE(fake, 1)) = mean(softplus(-fake))
        if n_fake < min_pallas_elements:
            return _softplus_mean(fake_logits, True)
        return _softplus_sum([fake_logits], [True]) / jnp.float32(n_fake)

    n_real = int(real_logits.size)
    if max(n_fake, n_real) < min_pallas_elements:
        return -(_softplus_mean(real_logits, True) + _softplus_mean(fake_logits, False))
    if n_real == n_fake:
        # fused: one pallas_call streams both tensors block-by-block
        s = _softplus_sum([real_logits, fake_logits], [True, False])
        return -(s / jnp.float32(n_fake))
    # sizes differ (rare): two independent reductions
    sr = _softplus_sum([real_logits], [True]) / jnp.float32(n_real)
    sf = _softplus_sum([fake_logits], [False]) / jnp.float32(n_fake)
    return -(sr + sf)


def _reference_bce_mean(x, target):
    x = x.astype(jnp.float32)
    bce = jnp.maximum(x, 0.0) - x * target + jnp.log1p(jnp.exp(-jnp.abs(x)))
    return jnp.mean(bce)


if __name__ == "__main__":
    key = jax.random.PRNGKey(0)
    k_fake, k_real, k_bfake, k_breal = jax.random.split(key, 4)

    # Small NCHW discriminator-style logits (batch=2, channels=4, spatial=16).
    fake_logits = jax.random.normal(k_fake, (2, 4, 16, 16), dtype=jnp.float32)
    real_logits = jax.random.normal(k_real, (2, 4, 16, 16), dtype=jnp.float32)

    # Force the Pallas path even at this tiny size so the kernel is exercised.
    gen_loss = adversarial_loss(fake_logits, min_pallas_elements=0)
    disc_loss = adversarial_loss(fake_logits, real_logits, min_pallas_elements=0)
    jax.block_until_ready((gen_loss, disc_loss))

    gen_ref = _reference_bce_mean(fake_logits, 1.0)
    disc_ref = -(_reference_bce_mean(real_logits, 1.0)
                 + _reference_bce_mean(fake_logits, 0.0))
    assert jnp.allclose(gen_loss, gen_ref, rtol=1e-5, atol=1e-6), (gen_loss, gen_ref)
    assert jnp.allclose(disc_loss, disc_ref, rtol=1e-5, atol=1e-6), (disc_loss, disc_ref)

    # Larger input (default kernel path): 2-way core split, one full block and one
    # partial (masked) block, fused two-tensor stream.
    big_fake = jax.random.normal(k_bfake, (4, 3, 256, 256), dtype=jnp.float32)
    big_real = jax.random.normal(k_breal, (4, 3, 256, 256), dtype=jnp.float32)
    big_disc = adversarial_loss(big_fake, big_real)
    jax.block_until_ready(big_disc)
    big_ref = -(_reference_bce_mean(big_real, 1.0)
                + _reference_bce_mean(big_fake, 0.0))
    assert jnp.allclose(big_disc, big_ref, rtol=1e-4, atol=1e-5), (big_disc, big_ref)

    # bf16 inputs stream at half the HBM traffic (slabs stay in input dtype).
    bf_fake = big_fake.astype(jnp.bfloat16)
    bf_real = big_real.astype(jnp.bfloat16)
    bf_disc = adversarial_loss(bf_fake, bf_real)
    jax.block_until_ready(bf_disc)
    bf_ref = -(_reference_bce_mean(bf_real, 1.0)
               + _reference_bce_mean(bf_fake, 0.0))
    assert jnp.allclose(bf_disc, bf_ref, rtol=1e-4, atol=1e-4), (bf_disc, bf_ref)

    print("KERNEL_OK")
</pallas_src>

<mosaic_0001>
module attributes {stable_mosaic.version = 11 : i64} {
  func.func @kernel(%arg0: i32, %arg1: i32, %arg2: memref<16x128xf32, #tpu.memory_space<vmem>>, %arg3: memref<8x128xf32, #tpu.memory_space<vmem>>, %arg4: memref<8x128xf32, #tpu.memory_space<vmem>>) attributes {dimension_semantics = [#tpu.dimension_semantics<parallel>, #tpu.dimension_semantics<arbitrary>], iteration_bounds = array<i64: 2, 1>, scalar_prefetch = 0 : i64, scratch_operands = 1 : i64, tpu.core_type = #tpu.core_type<tc>, window_params = [{transform_indices = @transform_0, window_bounds = array<i64: 16, 128>}, {transform_indices = @transform_1, window_bounds = array<i64: 8, 128>}]} {
    %c0_i32 = arith.constant 0 : i32
    %0 = arith.cmpi eq, %arg1, %c0_i32 : i32
    %1 = arith.extui %0 : i1 to i32
    %c0_i32_0 = arith.constant 0 : i32
    %2 = arith.cmpi ne, %1, %c0_i32_0 : i32
    scf.if %2 {
      %cst_10 = arith.constant 0.000000e+00 : f32
      %27 = vector.broadcast %cst_10 : f32 to vector<8x128xf32>
      %c0_11 = arith.constant 0 : index
      %c0_12 = arith.constant 0 : index
      %28 = vector.load %arg4[%c0_11, %c0_12] : memref<8x128xf32, #tpu.memory_space<vmem>>, vector<8x128xf32>
      tpu.vector_store %arg4[%c0_11, %c0_12], %27 {strides = array<i32>} : memref<8x128xf32, #tpu.memory_space<vmem>>, vector<8x128xf32>,
    } else {
    }
    %c0 = arith.constant 0 : index
    %c0_1 = arith.constant 0 : index
    %3 = vector.load %arg2[%c0, %c0_1] : memref<16x128xf32, #tpu.memory_space<vmem>>, vector<16x128xf32>
    %cst = arith.constant 0.000000e+00 : f32
    %4 = vector.broadcast %cst : f32 to vector<16x128xf32>
    %5 = arith.subf %4, %3 : vector<16x128xf32>
    %cst_2 = arith.constant 0.000000e+00 : f32
    %6 = vector.broadcast %cst_2 : f32 to vector<16x128xf32>
    %7 = arith.maximumf %5, %6 : vector<16x128xf32>
    %8 = math.absf %3 : vector<16x128xf32>
    %cst_3 = arith.constant 0.000000e+00 : f32
    %9 = vector.broadcast %cst_3 : f32 to vector<16x128xf32>
    %10 = arith.subf %9, %8 : vector<16x128xf32>
    %11 = math.exp %10 : vector<16x128xf32>
    %12 = math.log1p %11 : vector<16x128xf32>
    %13 = arith.addf %7, %12 : vector<16x128xf32>
    %c1_i32 = arith.constant 1 : i32
    %14 = arith.muli %arg0, %c1_i32 : i32
    %15 = arith.addi %14, %arg1 : i32
    %c1_i32_4 = arith.constant 1 : i32
    %16 = arith.addi %15, %c1_i32_4 : i32
    %c16_i32 = arith.constant 16 : i32
    %17 = arith.muli %16, %c16_i32 : i32
    %c16_i32_5 = arith.constant 16 : i32
    %18 = arith.cmpi sle, %17, %c16_i32_5 : i32
    %19 = arith.extui %18 : i1 to i32
    %c0_i32_6 = arith.constant 0 : i32
    %20 = arith.cmpi ne, %19, %c0_i32_6 : i32
    scf.if %20 {
      %c0_10 = arith.constant 0 : index
      %c0_11 = arith.constant 0 : index
      %27 = vector.load %arg4[%c0_10, %c0_11] : memref<8x128xf32, #tpu.memory_space<vmem>>, vector<8x128xf32>
      %28 = vector.shape_cast %13 : vector<16x128xf32> to vector<2x8x128xf32>
      %cst_12 = arith.constant dense<0.000000e+00> : vector<8x128xf32>
      %29 = vector.multi_reduction <add>, %28, %cst_12 [0] : vector<2x8x128xf32> to vector<8x128xf32>
      %30 = arith.addf %27, %29 : vector<8x128xf32>
      %c0_13 = arith.constant 0 : index
      %c0_14 = arith.constant 0 : index
      %31 = vector.load %arg4[%c0_13, %c0_14] : memref<8x128xf32, #tpu.memory_space<vmem>>, vector<8x128xf32>
      tpu.vector_store %arg4[%c0_13, %c0_14], %30 {strides = array<i32>} : memref<8x128xf32, #tpu.memory_space<vmem>>, vector<8x128xf32>,
    } else {
    }
    %true = arith.constant true
    %21 = arith.xori %18, %true : i1
    %22 = arith.extui %21 : i1 to i32
    %c0_i32_7 = arith.constant 0 : i32
    %23 = arith.cmpi ne, %22, %c0_i32_7 : i32
    scf.if %23 {
      %27 = tpu.iota {dimensions = array<i32: 0>} : vector<16x128xi32>
      %c16_i32_10 = arith.constant 16 : i32
      %28 = arith.muli %15, %c16_i32_10 : i32
      %29 = vector.broadcast %28 : i32 to vector<16x128xi32>
      %30 = arith.addi %27, %29 : vector<16x128xi32>
      %c0_11 = arith.constant 0 : index
      %c0_12 = arith.constant 0 : index
      %31 = vector.load %arg4[%c0_11, %c0_12] : memref<8x128xf32, #tpu.memory_space<vmem>>, vector<8x128xf32>
      %c16_i32_13 = arith.constant 16 : i32
      %32 = vector.broadcast %c16_i32_13 : i32 to vector<16x128xi32>
      %33 = arith.cmpi slt, %30, %32 : vector<16x128xi32>
      %cst_14 = arith.constant 0.000000e+00 : f32
      %34 = vector.broadcast %cst_14 : f32 to vector<16x128xf32>
      %35 = arith.select %33, %13, %34 : vector<16x128xi1>, vector<16x128xf32>
      %36 = vector.shape_cast %35 : vector<16x128xf32> to vector<2x8x128xf32>
      %cst_15 = arith.constant dense<0.000000e+00> : vector<8x128xf32>
      %37 = vector.multi_reduction <add>, %36, %cst_15 [0] : vector<2x8x128xf32> to vector<8x128xf32>
      %38 = arith.addf %31, %37 : vector<8x128xf32>
      %c0_16 = arith.constant 0 : index
      %c0_17 = arith.constant 0 : index
      %39 = vector.load %arg4[%c0_16, %c0_17] : memref<8x128xf32, #tpu.memory_space<vmem>>, vector<8x128xf32>
      tpu.vector_store %arg4[%c0_16, %c0_17], %38 {strides = array<i32>} : memref<8x128xf32, #tpu.memory_space<vmem>>, vector<8x128xf32>,
    } else {
    }
    %c0_i32_8 = arith.constant 0 : i32
    %24 = arith.cmpi eq, %arg1, %c0_i32_8 : i32
    %25 = arith.extui %24 : i1 to i32
    %c0_i32_9 = arith.constant 0 : i32
    %26 = arith.cmpi ne, %25, %c0_i32_9 : i32
    scf.if %26 {
      %c0_10 = arith.constant 0 : index
      %c0_11 = arith.constant 0 : index
      %27 = vector.load %arg4[%c0_10, %c0_11] : memref<8x128xf32, #tpu.memory_space<vmem>>, vector<8x128xf32>
      %c0_12 = arith.constant 0 : index
      %c0_13 = arith.constant 0 : index
      %28 = vector.load %arg3[%c0_12, %c0_13] : memref<8x128xf32, #tpu.memory_space<vmem>>, vector<8x128xf32>
      tpu.vector_store %arg3[%c0_12, %c0_13], %27 {strides = array<i32>} : memref<8x128xf32, #tpu.memory_space<vmem>>, vector<8x128xf32>,
    } else {
    }
    return
  }
  func.func @transform_0(%arg0: i32, %arg1: i32) -> (i32, i32) {
    %c1_i32 = arith.constant 1 : i32
    %0 = arith.muli %arg0, %c1_i32 : i32
    %1 = arith.addi %0, %arg1 : i32
    %c0_i32 = arith.constant 0 : i32
    %2 = arith.minsi %1, %c0_i32 : i32
    %c0_i32_0 = arith.constant 0 : i32
    %c0_i32_1 = arith.constant 0 : i32
    return %2, %c0_i32_0 : i32, i32
  }
  func.func @transform_1(%arg0: i32, %arg1: i32) -> (i32, i32) {
    %c0_i32 = arith.constant 0 : i32
    %c0_i32_0 = arith.constant 0 : i32
    return %arg0, %c0_i32 : i32, i32
  }
}

</mosaic_0001>

<bundles_post_ra>
// kernel: tpu_custom_call.1
= control target key start
LH: loop header
LB: loop body
LE: loop exit
PB: predicated region body
PF: predicated region fallthrough
CT: control target
= control target key end

     0   :  { %6 = vsyncpa [#allocation4], 0  ;;  %s769_s0 = inlined_call_operand.hbm [shape: f32[16,128], index: 0, kind: input, shape index: {}]   ;;  %s770_s1 = inlined_call_operand.hbm [shape: f32[16,128], index: 1, kind: output, shape index: {}]  }
   0x1   :  { %8 = vsyncpa [#allocation4 + $0x1], 0 }
   0x2   :  { %9 = vsyncpa [#allocation5], 0 }
   0x3   :  { %11 = vsyncpa [#allocation5 + $0x1], 0  ;;  %s594_s6 = smov 0   ;;  %s596_s7 = smov 0  }
   0x4   :  { %s598_s8 = smov 0   ;;  %s600_s9 = smov 0  }
   0x5   :  { %s602_s10 = smov 0   ;;  %s604_s11 = smov 0  }
   0x6   :  { %s606_s12 = smov 0   ;;  %s608_s13 = smov 0  }
   0x7 LB: > { %s326_s14 = sadd.s32 4294967295, %s577_s13   ;;  %s327_s15 = sadd.s32 4294967294, %s577_s13   ;;  %s577_s13 = sphi %s608_s13, %s17_s13   ;;  %s573_s12 = sphi %s606_s12, %s789_s12   ;;  %s569_s11 = sphi %s604_s11, %s788_s11   ;;  %s565_s10 = sphi %s602_s10, %s759_s10   ;;  %s561_s9 = sphi %s600_s9, %s787_s9   ;;  %s557_s8 = sphi %s598_s8, %s786_s8   ;;  %s553_s7 = sphi %s596_s7, %s785_s7   ;;  %s549_s6 = sphi %s594_s6, %s784_s6  }
   0x8   : > { %s29_s16 = sadd.s32 1, %s573_s12  ;;  %p546_p1 = scmp.ne.s32.totalorder %s565_s10, 0 }
   0x9   : > { %p31_p0 = scmp.ge.s32.totalorder %s29_s16, 2  ;;  %p50_p2 = scmp.eq.s32.totalorder %s577_s13, 0 }
   0xa   : > { %p55_p3 = scmp.ne.s32.totalorder %s565_s10, %s561_s9  ;;  %p56_p5 = scmp.eq.s32.totalorder %s326_s14, 0 }
   0xb   : > { %s791_s16 = smov (%p31_p0, %s29_s16), 0  ;;  %p640_p4 = por %p546_p1, %p50_p2 }
   0xc   : > { %p644_p6 = por %p56_p5, %p55_p3  ;;  %s65_s19 = ssub.s32 %s573_s12, %s791_s16 }
   0xd   : > { %p66_p7 = scmp.eq.s32.totalorder %s65_s19, 0  ;;  %s68_s20 = sadd.s32 1, %s557_s8 }
   0xe   : > { %s775_s18 = scalar_select %p644_p6, 1, 0 }
   0xf   : > { %s652_s21 = scalar_select %p66_p7, %s557_s8, %s68_s20  }
  0x10   : > { %p78_p8 = scmp.ne.s32.totalorder %s557_s8, %s553_s7  ;;  %p79_p9 = scmp.eq.s32.totalorder %s326_s14, 1 }
  0x11   : > { %p84_p10 = scmp.ne.s32.totalorder %s553_s7, %s549_s6  ;;  %p85_p11 = scmp.eq.s32.totalorder %s327_s15, 1 }
  0x12   : > { %p658_p12 = por %p79_p9, %p78_p8  ;;  %p359_p1 = scmp.lt.s32.totalorder %s577_s13, 2 }
  0x13   : > { %p663_p0 = por %p85_p11, %p84_p10  ;;  %s579_s24 = smov [#allocation3]  }
  0x14   : > { %s776_s22 = scalar_select %p658_p12, 1, 0 }
  0x15   : > { %s777_s23 = scalar_select %p663_p0, 1, 0 }
  0x16   : > { %s119_s25 = sshll.u32 %s579_s24, 4  ;;  %p670_p2 = pnand %p359_p1, %p640_p4  ;;  %s120_s25 = int_to_ptr.vmem [resolvable:$true] %s119_s25 }
  0x17   : > { %s444_s29 = scalar_lea.hbm %s769_s0, 256 }
  0x18   : > { %s778_s26 = scalar_select %p670_p2, 1, 0 }
  0x19   : > { %p445_p3 = scmp.ne.s32.totalorder %s769_s0, %s444_s29  ;;  %p446_p5 = pneg %p670_p2 }
  0x1a   : > { %p451_p9 = scmp.lt.u32.totalorder %s444_s29, %s444_s29  ;;  %p453_p4 = scmp.lt.u32.totalorder %s444_s29, %s769_s0 }
  0x1b   : > { %p447_p7 = pnand %p446_p5, %p445_p3 }
  0x1c   : > { %p454_p10 = por %p453_p4, %p451_p9 }
  0x1d   : > { %p448_p8 = pneg %p447_p7 }
  0x1f   : > { %p455_p11 = pnand %p454_p10, %p448_p8 }
  0x21   : > { %458 = shalt.err (!%p455_p11)
}
  0x22   : > { %s459_s5 = scalar_lea.vmem %s120_s25, 256  ;;  %s466_s9 = scalar_lea.vmem %s120_s25, 512 }
  0x23   : > { %p460_p1 = scmp.ne.s32.totalorder %s120_s25, %s459_s5  ;;  %p467_p12 = scmp.lt.s32.totalorder %s120_s25, %s120_s25 }
  0x24   : > { %p468_p6 = scmp.lt.s32.totalorder %s466_s9, %s459_s5 }
  0x25   : > { %p462_p13 = pnand %p460_p1, %p446_p5 }
  0x26   : > { %p469_p2 = por %p468_p6, %p467_p12 }
  0x27   : > { %p463_p0 = pneg %p462_p13 }
  0x29   : > { %p470_p3 = pnand %p469_p2, %p463_p0 }
  0x2b   : > { %473 = shalt.err (!%p470_p3)
}
  0x2c   : > { %s580_s14 = smov 128   ;;  %s581_s15 = smov 8  }
  0x2d   : > { %p779_p7 = scmp.ne.s32.totalorder %s778_s26, 0  ;;  %p333_p8 = scmp.ge.s32.totalorder %s577_s13, 1 }
  0x2e   : > { %p127_p9 = scmp.lt.s32.totalorder %s577_s13, 3 }
  0x2f   : > { %354 = dma.hbm_to_vmem [thread:$0]  (!%p779_p7), %s769_s0, 256, %s120_s25, [#allocation4], %s580_s14, %s580_s14, %s581_s15  }
  0x30   : > { %p128_p5 = pnand %p333_p8, %p127_p9 }
  0x31   : > { %s133_s20 = sand.u32 (!%p128_p5), 1, %s565_s10   ;;  %p780_p6 = scmp.ne.s32.totalorder (!%p128_p5), %s775_s18, 0 }
  0x32   : > { %131 = sbr.rel (%p128_p5) target bundleno = 141 (0x8d), region = 24  ;;  %s334_s24 = sshll.u32 (!%p128_p5), %s133_s20, 4 }
  0x33   : > { %s134_s27 = scalar_lea.sflag (!%p128_p5), [#allocation4], %s133_s20  ;;  %s137_s28 = scalar_lea.vmem (!%p128_p5), [#allocation3], %s334_s24 }
  0x39   : > { %539 = dma.done.wait (%p780_p6), %s134_s27, 256  }
  0x3a   : > { %541 = vsyncadd (%p780_p6), %s134_s27, 4294967040  ;;  %s153_s25 = sand.u32 1, %s553_s7   ;;  %s345_s26 = sshll.u32 %s569_s11, 4  ;;  %v582_v0 = vmov 0.0   ;;  %v165_v1 = vld [vmem:[%s137_s28] sm:$0xff]  ;;  %v166_v2 = vld [vmem:[%s137_s28 + $0x8] sm:$0xff] }
  0x3b   : > { %s701_s29 = sshll.u32 %s153_s25, 3  ;;  %164 = vst [vmem:[#allocation2] sm:$0xff] %v582_v0  ;;  %s705_s30 = sadd.s32 16, %s345_s26  ;;  %v171_v3 = vand.u32 2147483647, %v165_v1  ;;  %v167_v16 = vsub.f32 0.0, %v165_v1 }
  0x3c   : > { %v172_v4 = vand.u32 2147483647, %v166_v2  ;;  %v168_v19 = vsub.f32 0.0, %v166_v2  ;;  %s155_s18 = scalar_lea.vmem [#allocation6], %s701_s29  ;;  %p337_p12 = scmp.gt.s32.totalorder %s705_s30, 16 }
  0x3d   : > { %v173_v5 = vsub.f32 0.0, %v171_v3  ;;  %v169_v23 = vmax.f32 %v167_v16, 0.0 }
  0x3e   : > { %v174_v6 = vsub.f32 0.0, %v172_v4  ;;  %v170_v26 = vmax.f32 %v168_v19, 0.0 }
  0x3f   : > { %v175_v7 = vmul.f32 1.442695, %v173_v5 }
  0x40   : > { %v177_v8 = vmul.f32 1.442695, %v174_v6 }
  0x41   : > { %436 = vpow2.f32 %v175_v7 }
  0x42   : > { %438 = vpow2.f32 %v177_v8  ;;  %v206_v33 = vld [vmem:[#allocation2] sm:$0xff] (!%p337_p12) }
  0x4b   : > { %v437_v9 = vpop.eup %436 }
  0x4c   : > { %v439_v10 = vpop.eup %438  ;;  %v179_v11 = vadd.f32 1.0, %v437_v9  ;;  %v182_v13 = vmul.f32 -0.5, %v437_v9  ;;  %v185_v17 = vand.u32 2147483647, %v437_v9 }
  0x4d   : > { %v188_v12 = vadd.f32 1.0, %v439_v10  ;;  %v191_v14 = vmul.f32 -0.5, %v439_v10  ;;  %v194_v20 = vand.u32 2147483647, %v439_v10 }
  0x4e   : > { %440 = vlog2.f32 %v179_v11  ;;  %v183_v15 = vadd.f32 1.0, %v182_v13  ;;  %vm186_vm0 = vcmp.lt.f32.partialorder %v185_v17, 0.0004427343 }
  0x4f   : > { %442 = vlog2.f32 %v188_v12  ;;  %v192_v18 = vadd.f32 1.0, %v191_v14  ;;  %vm195_vm1 = vcmp.lt.f32.partialorder %v194_v20, 0.0004427343 }
  0x50   : > { %v184_v21 = vmul.f32 %v437_v9, %v183_v15 }
  0x51   : > { %v193_v24 = vmul.f32 %v439_v10, %v192_v18 }
  0x57   : > { %205 = sbr.rel (%p337_p12) target bundleno = 100 (0x64), region = 36 }
  0x58   : > { %v441_v22 = vpop.eup %440 }
  0x59   : > { %v443_v25 = vpop.eup %442  ;;  %v181_v27 = vmul.f32 0.6931472, %v441_v22 }
  0x5a   : > { %v190_v28 = vmul.f32 0.6931472, %v443_v25 }
  0x5b   : > { %v187_v29 = vsel %vm186_vm0, %v184_v21, %v181_v27 }
  0x5c   : > { %v196_v30 = vsel %vm195_vm1, %v193_v24, %v190_v28  ;;  %v197_v31 = vadd.f32 %v187_v29, %v169_v23 }
  0x5d   : > { %v198_v32 = vadd.f32 %v196_v30, %v170_v26 }
  0x5f   : > { %v207_v34 = vadd.f32 %v198_v32, %v197_v31 }
  0x61   : > { %v208_v35 = vadd.f32 %v207_v34, %v206_v33 }
  0x63   : > { %209 = vst [vmem:[#allocation2] sm:$0xff] %v208_v35 }
  0x64 PF: > { %p338_p13 = scmp.le.s32.totalorder %s705_s30, 16 }
  0x65   : > { %v214_v36 = vlaneseq (!%p338_p13)  ;;  %v218_v37 = vstv (!%p338_p13), %s345_s26 }
  0x66   : > { %213 = sbr.rel (%p338_p13) target bundleno = 116 (0x74), region = 40 }
  0x67   : > { %v215_v38 = vshrl.u32 (!%p338_p13), %v214_v36, 7 }
  0x69   : > { %v216_v39 = vadd.s32 (!%p338_p13), 8, %v215_v38  ;;  %v219_v40 = vadd.s32 (!%p338_p13), %v218_v37, %v215_v38 }
  0x6a   : > { %v221_v43 = vld [vmem:[#allocation2] sm:$0xff] (!%p338_p13) }
  0x6b   : > { %v220_v41 = vadd.s32 (!%p338_p13), %v218_v37, %v216_v39  ;;  %vm222_vm2 = vcmp.lt.s32.totalorder (!%p338_p13), %v219_v40, 16 }
  0x6c   : > { %v224_v42 = vsel (!%p338_p13), %vm222_vm2, %v197_v31, 0.0 }
  0x6d   : > { %vm223_vm3 = vcmp.lt.s32.totalorder %v220_v41, 16 }
  0x6e   : > { %v225_v44 = vsel %vm223_vm3, %v198_v32, 0.0 }
  0x6f   : > { %v226_v45 = vadd.f32 %v225_v44, %v224_v42 }
  0x71   : > { %v227_v46 = vadd.f32 %v226_v45, %v221_v43 }
  0x73   : > { %228 = vst [vmem:[#allocation2] sm:$0xff] %v227_v46 }
  0x74 PF: > { %s341_s2 = sshll.u32 %s569_s11, 7  ;;  %s248_s9 = sshll.u32 %s155_s18, 4  ;;  %s249_s9 = int_to_ptr.vmem [resolvable:$true] %s248_s9 }
  0x75   : > { %s718_s5 = scalar_lea.hbm %s770_s1, %s341_s2  ;;  %s235_s14 = scalar_lea.sflag [#allocation5], %s153_s25 }
  0x76   : > { %s474_s15 = scalar_lea.vmem %s249_s9, 128  ;;  %p781_p2 = scmp.ne.s32.totalorder %s776_s22, 0 }
  0x77   : > { %p475_p0 = scmp.ne.s32.totalorder %s249_s9, %s474_s15  ;;  %s583_s17 = smov [#allocation6]  }
  0x78   : > { %s478_s19 = sshll.u32 %s583_s17, 4  ;;  %s479_s19 = int_to_ptr.vmem [resolvable:$false] %s478_s19 }
  0x79   : > { %p476_p4 = pnand %p475_p0, %p781_p2  ;;  %s480_s11 = scalar_lea.vmem %s479_s19, 256 }
  0x7a   : > { %v232_v47 = vld [vmem:[#allocation2] sm:$0xff]  ;;  %p481_p11 = scmp.lt.s32.totalorder %s249_s9, %s479_s19  ;;  %p482_p1 = scmp.lt.s32.totalorder %s480_s11, %s474_s15 }
  0x7b   : > { %233 = vst [vmem:[%s155_s18] sm:$0xff] %v232_v47  ;;  %p477_p10 = pneg %p476_p4 }
  0x7c   : > { %p483_p3 = por %p482_p1, %p481_p11 }
  0x7e   : > { %p484_p7 = pnand %p483_p3, %p477_p10 }
  0x80   : > { %487 = shalt.err (!%p484_p7)
}
  0x81   : > { %s488_s20 = scalar_lea.hbm %s718_s5, 128  ;;  %s492_s28 = scalar_lea.hbm %s770_s1, 256 }
  0x82   : > { %p489_p8 = scmp.ne.s32.totalorder %s718_s5, %s488_s20  ;;  %p493_p6 = scmp.lt.u32.totalorder %s718_s5, %s770_s1 }
  0x83   : > { %p494_p12 = scmp.lt.u32.totalorder %s492_s28, %s488_s20  ;;  %p496_p0 = scmp.lt.u32.totalorder %s488_s20, %s718_s5 }
  0x84   : > { %p490_p9 = pnand %p489_p8, %p781_p2 }
  0x85   : > { %p495_p13 = por %p494_p12, %p493_p6 }
  0x86   : > { %p491_p5 = pneg %p490_p9 }
  0x87   : > { %p497_p4 = por %p496_p0, %p495_p13 }
  0x89   : > { %p498_p10 = pnand %p497_p4, %p491_p5 }
  0x8b   : > { %501 = shalt.err (!%p498_p10)
}
  0x8c   : > { %349 = dma.vmem_to_hbm [thread:$0]  (%p781_p2), %s249_s9, 128, %s718_s5, %s235_s14  }
  0x8d PF: > { %s260_s29 = sand.u32 1, %s549_s6   ;;  %p782_p11 = scmp.ne.s32.totalorder %s777_s23, 0 }
  0x8e   : > { %p783_p1 = scmp.ge.s32.totalorder %s577_s13, 2  ;;  %s261_s30 = scalar_lea.sflag [#allocation5], %s260_s29 }
  0x90   : > { %p356_p3 = pnand %p783_p1, %p782_p11 }
  0x92   : > { %543 = dma.done.wait (!%p356_p3), %s261_s30, 128  }
  0x93   : > { %545 = vsyncadd (!%p356_p3), %s261_s30, 4294967168  ;;  %s17_s13 = sadd.s32 1, %s577_s13   ;;  %s784_s6 = smov %s553_s7 }
  0x94   : > { %p14_p7 = scmp.ge.s32.totalorder %s17_s13, 4   ;;  %s785_s7 = smov %s557_s8 }
  0x95   : > { %s786_s8 = smov %s652_s21  ;;  %s787_s9 = smov %s565_s10 }
  0x96   : > { %s759_s10 = smov 0   ;;  %s788_s11 = smov %s573_s12 }
  0x97   : > { %s789_s12 = smov %s791_s16  ;;  %16 = sbr.rel (!%p14_p7) target bundleno = 7 (0x7), region = 85 }
  0x9e   :  { %266 = vsyncpa [#allocation4], 1 }
  0x9f   :  { %268 = vsyncpa [#allocation4 + $0x1], 1 }
  0xa0   :  { %269 = vsyncpa [#allocation5], 1 }
  0xa1   :  { %271 = vsyncpa [#allocation5 + $0x1], 1 }

</bundles_post_ra>
